<compile_context>
chip_gen: v6e
topology: v6e:2x2x1
jax: 0.10.0
libtpu: 0.0.40
codegen_flags: <defaults>
</compile_context>

<pallas_src>
import jax
import jax.numpy as jnp
from jax.experimental import pallas as pl
from jax.experimental.pallas import tpu as pltpu


def _round_up(x: int, m: int) -> int:
    return (x + m - 1) // m * m


def bpnet_kernel(x_ref, w1_ref, b1_ref, w2_ref, b2_ref, out_ref):
    # h = tanh(x @ W1 + b1) -- MXU accumulates in f32; bias-add + tanh in f32.
    h = jnp.dot(x_ref[...], w1_ref[...], preferred_element_type=jnp.float32)
    h = jnp.tanh(h + b1_ref[...])
    # y = h @ W2 + b2 -- feed the MXU in the weights' (bf16) dtype, f32 acc.
    y = jnp.dot(h.astype(w2_ref.dtype), w2_ref[...],
                preferred_element_type=jnp.float32) + b2_ref[...]
    out_ref[...] = y.astype(out_ref.dtype)


def bpnet_forward(x, w1, b1, w2, b2, *, tile_n=None, compute_dtype=jnp.bfloat16):
    """Pallas forward for BPNet.

    x:  (N, D_in)
    w1: (D_in, H)   (= torch input_linear.weight.T)
    b1: (H,) or (1, H)
    w2: (H, D_out)  (= torch output_linear.weight.T)
    b2: (D_out,) or (1, D_out)
    returns (N, D_out) f32
    """
    N, D_in = x.shape
    H = w1.shape[1]
    D_out = w2.shape[1]

    # bf16 inputs halve the dominant x HBM stream and hit the native MXU path;
    # all accumulation and elementwise math stays f32 inside the kernel.
    xc = x.astype(compute_dtype)
    w1c = w1.astype(compute_dtype)
    w2c = w2.astype(compute_dtype)
    b1f = b1.astype(jnp.float32).reshape(1, H)
    b2f = b2.astype(jnp.float32).reshape(1, D_out)

    # ---- batch tile selection ------------------------------------------------
    # Cap the double-buffered per-tile footprint (x block + out block) plus the
    # VMEM-resident weights at ~12 MiB so it fits v5e's 16 MiB scoped VMEM
    # without a vmem_limit override (v6e/v7x have more headroom).
    in_isz = jnp.dtype(compute_dtype).itemsize
    bytes_per_row = 2 * (D_in * in_isz + D_out * 4)          # double-buffered
    weight_bytes = (D_in * H + H * D_out) * in_isz + (H + D_out) * 4
    budget = 12 * 1024 * 1024 - weight_bytes
    cap = max(8, (budget // max(bytes_per_row, 1)) // 8 * 8)

    if tile_n is None:
        # Scale with N: >= 2 grid steps when possible (megacore), up to 8192.
        tile_n = min(8192, _round_up(pl.cdiv(N, 2), 8))
    tile_n = max(8, min(_round_up(tile_n, 8), cap, _round_up(N, 8)))

    # Ragged last block (N not a multiple of tile_n) is handled by Pallas:
    # tail-row stores are masked, so no jnp.pad / output slice is needed.
    grid = (pl.cdiv(N, tile_n),)

    out = pl.pallas_call(
        bpnet_kernel,
        out_shape=jax.ShapeDtypeStruct((N, D_out), jnp.float32),
        grid=grid,
        in_specs=[
            pl.BlockSpec((tile_n, D_in), lambda i: (i, 0)),  # x : streamed rows
            pl.BlockSpec((D_in, H),      lambda i: (0, 0)),  # W1: VMEM-resident
            pl.BlockSpec((1, H),         lambda i: (0, 0)),  # b1: VMEM-resident
            pl.BlockSpec((H, D_out),     lambda i: (0, 0)),  # W2: VMEM-resident
            pl.BlockSpec((1, D_out),     lambda i: (0, 0)),  # b2: VMEM-resident
        ],
        out_specs=pl.BlockSpec((tile_n, D_out), lambda i: (i, 0)),
        compiler_params=pltpu.CompilerParams(
            # Independent batch tiles -> shard across v7x's 2 TensorCores.
            dimension_semantics=("parallel",),
        ),
    )(xc, w1c, b1f, w2c, b2f)

    return out


if __name__ == "__main__":
    # Small shapes consistent with the module: x is (N, D_in).
    N, D_in, H, D_out = 64, 32, 64, 16

    key = jax.random.PRNGKey(0)
    kx, kw1, kb1, kw2, kb2 = jax.random.split(key, 5)

    x = jax.random.normal(kx, (N, D_in), dtype=jnp.float32)
    w1 = jax.random.normal(kw1, (D_in, H), dtype=jnp.float32) * 0.1   # input_linear.weight.T
    b1 = jax.random.normal(kb1, (1, H), dtype=jnp.float32) * 0.1      # input_linear.bias
    w2 = jax.random.normal(kw2, (H, D_out), dtype=jnp.float32) * 0.1  # output_linear.weight.T
    b2 = jax.random.normal(kb2, (1, D_out), dtype=jnp.float32) * 0.1  # output_linear.bias

    y = bpnet_forward(x, w1, b1, w2, b2)
    jax.block_until_ready(y)

    # Pure-JAX f32 reference: Linear -> Tanh -> Linear.
    y_ref = jnp.tanh(x @ w1 + b1) @ w2 + b2
    assert y.shape == y_ref.shape
    # Tolerance relaxed because the kernel feeds the MXU bf16 inputs (f32 acc).
    assert jnp.allclose(y, y_ref, atol=3e-2, rtol=3e-2), "mismatch vs reference"

    print("KERNEL_OK")
</pallas_src>

<mosaic_0001>
module attributes {stable_mosaic.version = 11 : i64} {
  func.func @bpnet_kernel(%arg0: i32, %arg1: memref<32x32xbf16, #tpu.memory_space<vmem>>, %arg2: memref<32x64xbf16, #tpu.memory_space<vmem>>, %arg3: memref<1x64xf32, #tpu.memory_space<vmem>>, %arg4: memref<64x16xbf16, #tpu.memory_space<vmem>>, %arg5: memref<1x16xf32, #tpu.memory_space<vmem>>, %arg6: memref<32x16xf32, #tpu.memory_space<vmem>>) attributes {dimension_semantics = [#tpu.dimension_semantics<parallel>], iteration_bounds = array<i64: 2>, scalar_prefetch = 0 : i64, scratch_operands = 0 : i64, tpu.core_type = #tpu.core_type<tc>, window_params = [{transform_indices = @transform_0, window_bounds = array<i64: 32, 32>}, {pipeline_mode = #tpu.pipeline_mode<synchronous>, transform_indices = @transform_1, window_bounds = array<i64: 32, 64>}, {pipeline_mode = #tpu.pipeline_mode<synchronous>, transform_indices = @transform_2, window_bounds = array<i64: 1, 64>}, {pipeline_mode = #tpu.pipeline_mode<synchronous>, transform_indices = @transform_3, window_bounds = array<i64: 64, 16>}, {pipeline_mode = #tpu.pipeline_mode<synchronous>, transform_indices = @transform_4, window_bounds = array<i64: 1, 16>}, {transform_indices = @transform_5, window_bounds = array<i64: 32, 16>}]} {
    %c0 = arith.constant 0 : index
    %c0_0 = arith.constant 0 : index
    %0 = vector.load %arg1[%c0, %c0_0] : memref<32x32xbf16, #tpu.memory_space<vmem>>, vector<32x32xbf16>
    %c0_1 = arith.constant 0 : index
    %c0_2 = arith.constant 0 : index
    %1 = vector.load %arg2[%c0_1, %c0_2] : memref<32x64xbf16, #tpu.memory_space<vmem>>, vector<32x64xbf16>
    %cst = arith.constant dense<0.000000e+00> : vector<32x64xf32>
    %2 = tpu.matmul %0, %1, %cst {dimension_numbers = #tpu.dot_dimension_numbers<[1], [0], [0], [1], [0, 0, 1, 1], [], []>} : vector<32x32xbf16>, vector<32x64xbf16>, vector<32x64xf32> -> vector<32x64xf32>
    %c0_3 = arith.constant 0 : index
    %c0_4 = arith.constant 0 : index
    %3 = vector.load %arg3[%c0_3, %c0_4] : memref<1x64xf32, #tpu.memory_space<vmem>>, vector<1x64xf32>
    %4 = vector.broadcast %3 : vector<1x64xf32> to vector<32x64xf32>
    %5 = arith.addf %2, %4 : vector<32x64xf32>
    %6 = math.tanh %5 : vector<32x64xf32>
    %7 = arith.truncf %6 : vector<32x64xf32> to vector<32x64xbf16>
    %c0_5 = arith.constant 0 : index
    %c0_6 = arith.constant 0 : index
    %8 = vector.load %arg4[%c0_5, %c0_6] : memref<64x16xbf16, #tpu.memory_space<vmem>>, vector<64x16xbf16>
    %cst_7 = arith.constant dense<0.000000e+00> : vector<32x16xf32>
    %9 = tpu.matmul %7, %8, %cst_7 {dimension_numbers = #tpu.dot_dimension_numbers<[1], [0], [0], [1], [0, 0, 1, 1], [], []>} : vector<32x64xbf16>, vector<64x16xbf16>, vector<32x16xf32> -> vector<32x16xf32>
    %c0_8 = arith.constant 0 : index
    %c0_9 = arith.constant 0 : index
    %10 = vector.load %arg5[%c0_8, %c0_9] : memref<1x16xf32, #tpu.memory_space<vmem>>, vector<1x16xf32>
    %11 = vector.broadcast %10 : vector<1x16xf32> to vector<32x16xf32>
    %12 = arith.addf %9, %11 : vector<32x16xf32>
    %c0_10 = arith.constant 0 : index
    %c0_11 = arith.constant 0 : index
    %13 = vector.load %arg6[%c0_10, %c0_11] : memref<32x16xf32, #tpu.memory_space<vmem>>, vector<32x16xf32>
    tpu.vector_store %arg6[%c0_10, %c0_11], %12 {strides = array<i32>} : memref<32x16xf32, #tpu.memory_space<vmem>>, vector<32x16xf32>,
    return
  }
  func.func @transform_0(%arg0: i32) -> (i32, i32) {
    %c0_i32 = arith.constant 0 : i32
    %c0_i32_0 = arith.constant 0 : i32
    return %arg0, %c0_i32 : i32, i32
  }
  func.func @transform_1(%arg0: i32) -> (i32, i32) {
    %c0_i32 = arith.constant 0 : i32
    %c0_i32_0 = arith.constant 0 : i32
    %c0_i32_1 = arith.constant 0 : i32
    return %c0_i32, %c0_i32_0 : i32, i32
  }
  func.func @transform_2(%arg0: i32) -> (i32, i32) {
    %c0_i32 = arith.constant 0 : i32
    %c0_i32_0 = arith.constant 0 : i32
    %c0_i32_1 = arith.constant 0 : i32
    return %c0_i32, %c0_i32_0 : i32, i32
  }
  func.func @transform_3(%arg0: i32) -> (i32, i32) {
    %c0_i32 = arith.constant 0 : i32
    %c0_i32_0 = arith.constant 0 : i32
    %c0_i32_1 = arith.constant 0 : i32
    return %c0_i32, %c0_i32_0 : i32, i32
  }
  func.func @transform_4(%arg0: i32) -> (i32, i32) {
    %c0_i32 = arith.constant 0 : i32
    %c0_i32_0 = arith.constant 0 : i32
    %c0_i32_1 = arith.constant 0 : i32
    return %c0_i32, %c0_i32_0 : i32, i32
  }
  func.func @transform_5(%arg0: i32) -> (i32, i32) {
    %c0_i32 = arith.constant 0 : i32
    %c0_i32_0 = arith.constant 0 : i32
    return %arg0, %c0_i32 : i32, i32
  }
}

</mosaic_0001>

<bundles_post_ra>
// kernel: tpu_custom_call.1
= control target key start
LH: loop header
LB: loop body
LE: loop exit
PB: predicated region body
PF: predicated region fallthrough
CT: control target
= control target key end

     0   :  { %s601_s18 = smov 0   ;;  %s646_s0 = inlined_call_operand.vmem [shape: bf16[64,32], index: 0, kind: input, shape index: {}]   ;;  %s647_s1 = inlined_call_operand.vmem [shape: bf16[32,64], index: 1, kind: input, shape index: {}]   ;;  %s648_s2 = inlined_call_operand.vmem [shape: f32[1,64], index: 2, kind: input, shape index: {}]   ;;  %s649_s3 = inlined_call_operand.vmem [shape: bf16[64,16], index: 3, kind: input, shape index: {}]   ;;  %s650_s4 = inlined_call_operand.vmem [shape: f32[1,16], index: 4, kind: input, shape index: {}]   ;;  %s651_s5 = inlined_call_operand.vmem [shape: f32[64,16], index: 5, kind: output, shape index: {}]  }
   0x1 LB: > { %s484_s19 = sadd.s32 4294967295, %s569_s18   ;;  %p488_p0 = scmp.ge.s32.totalorder %s569_s18, 1  ;;  %s569_s18 = sphi %s601_s18, %s15_s18  }
   0x2   : > { %p188_p1 = scmp.lt.s32.totalorder %s569_s18, 3 }
   0x4   : > { %p189_p2 = pnand %p488_p0, %p188_p1 }
   0x5   : > { %s489_s22 = sshll.u32 (!%p189_p2), %s484_s19, 2 }
   0x6   : > { %192 = sbr.rel (%p189_p2) target bundleno = 440 (0x1b8), region = 40  ;;  %p217_p3 = scmp.lt.s32.totalorder (!%p189_p2), %s489_s22, 7 }
   0xb   : > { %v547_v0 = vld [vmem:[%s647_s1 + $0x8] sm:$0xff]   ;;  %v548_v1 = vld [vmem:[%s647_s1] sm:$0xff]   ;;  %s653_s22 = smov (!%p217_p3, %s489_s22), 7  ;;  %vm266_vm0 = vcmask 261120   ;;  %v551_v4 = vld [vmem:[%s649_s3 + $0x18] sm:$0xff]   ;;  %vm367_vm1 = vcmask 523264  }
   0xc   : > { %519 = vmatprep.subr.bf16.mxu0 %v547_v0  ;;  %s490_s25 = sshll.u32 %s653_s22, 2  ;;  %v552_v5 = vld [vmem:[%s649_s3 + $0x10] sm:$0xff]   ;;  %527 = vmatprep.subr.bf16.mxu1 %v551_v4  ;;  %v553_v6 = vld [vmem:[%s649_s3 + $0x8] sm:$0xff]   ;;  %v554_v7 = vld [vmem:[%s649_s3] sm:$0xff]   ;;  %s492_s14 = sshll.u32 %s653_s22, 3  ;;  %vm423_vm2 = vcmask 130048  }
   0xd   : > { %520 = vmatpush3.bf16.msra.mxu0 %v547_v0  ;;  %s220_s28 = scalar_lea.vmem %s646_s0, %s490_s25  ;;  %528 = vmatpush3.bf16.msra.mxu1 %v551_v4  ;;  %v493_v9 = vld [vmem:[%s648_s2] ss:$0 sm:$0xff]  ;;  %s226_s20 = scalar_lea.vmem %s651_s5, %s492_s14 }
   0xe   : > { %521 = vmatprep.subr.bf16.mxu0 %v548_v1  ;;  %v549_v2 = vld [vmem:[%s220_s28] sm:$0xff]   ;;  %v550_v3 = vld [vmem:[%s220_s28 + $0x8] sm:$0xff]   ;;  %529 = vmatprep.subr.bf16.mxu1 %v552_v5 }
   0xf   : > { %523 = vmatprep.mubr.msk.bf16.mxu0 %vm266_vm0, %v549_v2  ;;  %v500_v24 = vld [vmem:[%s650_s4] ss:$0 sm:$0xff] }
  0x11   : > { %522 = vmatpush3.bf16.msra.mxu0 %v548_v1  ;;  %530 = vmatpush3.bf16.msra.mxu1 %v552_v5 }
  0x12   : > { %531 = vmatprep.subr.bf16.mxu1 %v553_v6 }
  0x14   : > { %524 = vmatmul.mubr.msk.bf16.vlgmr.msra.gmra.mxu0 %vm266_vm0, %v550_v3 }
  0x15   : > { %532 = vmatpush3.bf16.msra.mxu1 %v553_v6 }
  0x16   : > { %533 = vmatprep.subr.bf16.mxu1 %v554_v7 }
  0x19   : > { %534 = vmatpush3.bf16.msra.mxu1 %v554_v7 }
  0xd4   : > { %v525_v8 = vpop.f32.mrf.mxu0 }
  0xd5   : > { %v316_v14 = vadd.f32 %v525_v8, %v493_v9 }
  0xd6   : > { %v307_v10 = vpop.f32.mrf.mxu0 }
  0xd7   : > { %v308_v11 = vadd.f32 %v493_v9, %v307_v10 }
  0xd8   : > { %v526_v12 = vpop.f32.mrf.mxu0 }
  0xd9   : > { %v319_v13 = vadd.f32 %v526_v12, %v493_v9  ;;  %555 = vtanh.f32 %v308_v11 }
  0xda   : > { %v310_v15 = vpop.f32.mrf.mxu0 }
  0xdb   : > { %v311_v16 = vadd.f32 %v493_v9, %v310_v15  ;;  %557 = vtanh.f32 %v319_v13 }
  0xdd   : > { %559 = vtanh.f32 %v311_v16 }
  0xde   : > { %561 = vtanh.f32 %v316_v14 }
  0xe6   : > { %v556_v17 = vpop.eup %555 }
  0xe8   : > { %v558_v18 = vpop.eup %557 }
  0xea   : > { %v560_v19 = vpop.eup %559 }
  0xeb   : > { %v562_v20 = vpop.eup %561  ;;  %v326_v21 = vpack.c.bf16 %v560_v19, %v556_v17 }
  0xec   : > { %v327_v22 = vpack.c.bf16 %v558_v18, %v562_v20 }
  0xed   : > { %535 = vmatprep.mubr.msk.bf16.mxu1 %vm367_vm1, %v326_v21 }
  0xee   : > { %536 = vmatmul.mubr.msk.bf16.vlgmr.msra.gmra.mxu1 %vm367_vm1, %v327_v22 }
 0x1ae   : > { %v537_v23 = vpop.f32.mrf.mxu1 }
 0x1af   : > { %v417_v30 = vadd.f32 %v537_v23, %v500_v24 }
 0x1b0   : > { %v408_v25 = vpop.f32.mrf.mxu1 }
 0x1b1   : > { %v409_v26 = vadd.f32 %v500_v24, %v408_v25  ;;  %426 = vst.msk [vmem:[%s226_s20 + $0x10] sm:$0xff] %vm423_vm2, %v417_v30 }
 0x1b2   : > { %v538_v27 = vpop.f32.mrf.mxu1 }
 0x1b3   : > { %424 = vst.msk [vmem:[%s226_s20] sm:$0xff] %vm423_vm2, %v409_v26  ;;  %v420_v31 = vadd.f32 %v538_v27, %v500_v24 }
 0x1b4   : > { %v411_v28 = vpop.f32.mrf.mxu1 }
 0x1b5   : > { %v412_v29 = vadd.f32 %v500_v24, %v411_v28  ;;  %427 = vst.msk [vmem:[%s226_s20 + $0x18] sm:$0xff] %vm423_vm2, %v420_v31 }
 0x1b7   : > { %425 = vst.msk [vmem:[%s226_s20 + $0x8] sm:$0xff] %vm423_vm2, %v412_v29 }
 0x1b8 PF: > { %s15_s18 = sadd.s32 1, %s569_s18  }
 0x1b9   : > { %p12_p4 = scmp.ge.s32.totalorder %s15_s18, 4  }
 0x1bb   :  { %14 = sbr.rel (!%p12_p4) target bundleno = 1 (0x1), region = 70 }

</bundles_post_ra>
